<compile_context>
chip_gen: v5e
topology: v5e:2x2
jax: 0.10.0
libtpu: 0.0.40
codegen_flags: <defaults>
</compile_context>

<pallas_src>
import functools

import jax
import jax.numpy as jnp
from jax import lax
from jax.experimental import pallas as pl
from jax.experimental.pallas import tpu as pltpu


def _round_up(x, m):
    return (x + m - 1) // m * m


def _contrastive_loss_kernel(q_ref, k_ref, loss_ref, *, inv_temperature, n_real,
                             tq, use_bf16_matmul):
    # TODO(synk): PyTorch raises ValueError on nan/inf at several stages; Pallas
    # kernels cannot raise, so those runtime checks are omitted.
    q = q_ref[...].astype(jnp.float32)            # (TQ, Dp) query slab
    k = k_ref[...].astype(jnp.float32)            # (Np, Dp) all keys (resident block)

    # F.normalize(p=2, dim=1): x / max(||x||, 1e-12) == x * rsqrt(max(||x||^2, 1e-24))
    # (rsqrt runs on the EUP; zero-padded columns contribute 0 to the sum of squares).
    q_fn = q * lax.rsqrt(jnp.maximum(jnp.sum(q * q, axis=1, keepdims=True), 1e-24))
    k_fn = k * lax.rsqrt(jnp.maximum(jnp.sum(k * k, axis=1, keepdims=True), 1e-24))

    if use_bf16_matmul:
        q_mm = q_fn.astype(jnp.bfloat16)
        k_mm = k_fn.astype(jnp.bfloat16)
    else:
        q_mm, k_mm = q_fn, k_fn

    # q_fn @ k_fn.T without materializing the transpose: contract dim 1 of both.
    sim = lax.dot_general(q_mm, k_mm, (((1,), (1,)), ((), ())),
                          preferred_element_type=jnp.float32)   # (TQ, Np)
    sim = sim * inv_temperature
    sim = jnp.maximum(sim, 1e-9)                                 # clamp(min=1e-9)
    exp_sim = jnp.exp(sim)

    n_pad = exp_sim.shape[1]
    col = lax.broadcasted_iota(jnp.int32, exp_sim.shape, 1)
    if n_pad != n_real:
        # Zero contributions from zero-padded key rows (their clamped sim would
        # otherwise contribute exp(1e-9) ~= 1 to every row sum).
        exp_sim = jnp.where(col < n_real, exp_sim, 0.0)

    # Global row index of each query row in this tile -> diagonal mask.
    row = lax.broadcasted_iota(jnp.int32, exp_sim.shape, 0) + pl.program_id(0) * tq

    total = jnp.sum(exp_sim, axis=-1, keepdims=True)                          # (TQ, 1)
    neg = jnp.sum(jnp.where(col == row, exp_sim, 0.0), axis=-1, keepdims=True)
    pos = total - neg                                                         # off-diag sum

    denom = jnp.maximum(pos + neg, 1e-9)
    # -log(pos / denom) == log(denom) - log(pos); two EUP logs, no VPU divide.
    loss_ref[...] = jnp.log(denom) - jnp.log(pos)


def contrastive_loss(features, labels, temperature=0.5, use_bf16_matmul=False):
    """Pallas TPU implementation of ContrastiveLoss.forward.

    features: (N, D) float array; labels: (N,) (only its length is used).
    Returns a float32 scalar.
    """
    n, d = features.shape
    assert labels.shape[0] == n  # labels only supply the leading dim, as in PyTorch

    # Lane-dense / sublane-aligned padding. Zero-padded feature columns change
    # neither norms nor dot products; padded rows are masked in-kernel (columns)
    # and dropped from the final mean (rows).
    d_pad = _round_up(d, 128)
    n8 = _round_up(n, 8)
    tq = min(128, n8)              # query-row tile (multiple of 8 by construction)
    n_pad = _round_up(n8, tq)

    f = features.astype(jnp.float32)
    if (n_pad, d_pad) != (n, d):
        f = jnp.pad(f, ((0, n_pad - n), (0, d_pad - d)))

    kernel = functools.partial(
        _contrastive_loss_kernel,
        inv_temperature=1.0 / float(temperature),
        n_real=n,
        tq=tq,
        use_bf16_matmul=use_bf16_matmul,
    )

    per_row = pl.pallas_call(
        kernel,
        out_shape=jax.ShapeDtypeStruct((n_pad, 1), jnp.float32),
        grid_spec=pltpu.PrefetchScalarGridSpec(
            num_scalar_prefetch=0,
            grid=(n_pad // tq,),
            in_specs=[
                # (TQ, Dp) query slab for this grid step.
                pl.BlockSpec((tq, d_pad), lambda i: (i, 0)),
                # Full key matrix; same block index every step -> stays resident.
                pl.BlockSpec((n_pad, d_pad), lambda i: (0, 0)),
            ],
            out_specs=pl.BlockSpec((tq, 1), lambda i: (i, 0)),
        ),
        compiler_params=pltpu.CompilerParams(
            dimension_semantics=("parallel",)),   # row tiles split across TCs on v7x
    )(f, f)

    # Mean over the real rows only (padded query rows are discarded).
    return jnp.mean(per_row[:n, 0])


def _reference_loss(features, labels, temperature=0.5):
    f = features.astype(jnp.float32)
    fn = f / jnp.maximum(jnp.linalg.norm(f, axis=1, keepdims=True), 1e-12)
    sim = jnp.maximum(fn @ fn.T / temperature, 1e-9)
    e = jnp.exp(sim)
    eye = jnp.eye(f.shape[0], dtype=bool)
    pos = jnp.sum(jnp.where(eye, 0.0, e), axis=-1)
    neg = jnp.sum(jnp.where(eye, e, 0.0), axis=-1)
    denom = jnp.maximum(pos + neg, 1e-9)
    return jnp.mean(-jnp.log(pos / denom))


if __name__ == "__main__":
    key = jax.random.PRNGKey(0)
    k_feat, k_lab = jax.random.split(key)

    N, D = 8, 32  # small shapes: batch=8, hidden=32
    features = jax.random.normal(k_feat, (N, D), dtype=jnp.float32)
    labels = jax.random.randint(k_lab, (N,), 0, 4, dtype=jnp.int32)

    loss = jax.block_until_ready(contrastive_loss(features, labels))
    ref = jax.block_until_ready(_reference_loss(features, labels))

    assert jnp.isfinite(loss), "loss is not finite"
    assert jnp.allclose(loss, ref, rtol=1e-5, atol=1e-5), (loss, ref)
    print("KERNEL_OK")
</pallas_src>

<mosaic_0001>
module attributes {stable_mosaic.version = 11 : i64} {
  func.func @_contrastive_loss_kernel(%arg0: i32, %arg1: memref<8x128xf32, #tpu.memory_space<vmem>>, %arg2: memref<8x128xf32, #tpu.memory_space<vmem>>, %arg3: memref<8x1xf32, #tpu.memory_space<vmem>>) attributes {dimension_semantics = [#tpu.dimension_semantics<parallel>], iteration_bounds = array<i64: 1>, scalar_prefetch = 0 : i64, scratch_operands = 0 : i64, tpu.core_type = #tpu.core_type<tc>, window_params = [{transform_indices = @transform_0, window_bounds = array<i64: 8, 128>}, {pipeline_mode = #tpu.pipeline_mode<synchronous>, transform_indices = @transform_1, window_bounds = array<i64: 8, 128>}, {transform_indices = @transform_2, window_bounds = array<i64: 8, 1>}]} {
    %c0 = arith.constant 0 : index
    %c0_0 = arith.constant 0 : index
    %0 = vector.load %arg1[%c0, %c0_0] : memref<8x128xf32, #tpu.memory_space<vmem>>, vector<8x128xf32>
    %c0_1 = arith.constant 0 : index
    %c0_2 = arith.constant 0 : index
    %1 = vector.load %arg2[%c0_1, %c0_2] : memref<8x128xf32, #tpu.memory_space<vmem>>, vector<8x128xf32>
    %2 = arith.mulf %0, %0 : vector<8x128xf32>
    %cst = arith.constant dense<0.000000e+00> : vector<8xf32>
    %3 = vector.multi_reduction <add>, %2, %cst [1] : vector<8x128xf32> to vector<8xf32>
    %4 = vector.shape_cast %3 : vector<8xf32> to vector<8x1xf32>
    %cst_3 = arith.constant 1.000000e-24 : f32
    %5 = vector.broadcast %cst_3 : f32 to vector<8x1xf32>
    %6 = arith.maximumf %4, %5 : vector<8x1xf32>
    %7 = math.rsqrt %6 : vector<8x1xf32>
    %8 = vector.broadcast %7 : vector<8x1xf32> to vector<8x128xf32>
    %9 = arith.mulf %0, %8 : vector<8x128xf32>
    %10 = arith.mulf %1, %1 : vector<8x128xf32>
    %cst_4 = arith.constant dense<0.000000e+00> : vector<8xf32>
    %11 = vector.multi_reduction <add>, %10, %cst_4 [1] : vector<8x128xf32> to vector<8xf32>
    %12 = vector.shape_cast %11 : vector<8xf32> to vector<8x1xf32>
    %cst_5 = arith.constant 1.000000e-24 : f32
    %13 = vector.broadcast %cst_5 : f32 to vector<8x1xf32>
    %14 = arith.maximumf %12, %13 : vector<8x1xf32>
    %15 = math.rsqrt %14 : vector<8x1xf32>
    %16 = vector.broadcast %15 : vector<8x1xf32> to vector<8x128xf32>
    %17 = arith.mulf %1, %16 : vector<8x128xf32>
    %cst_6 = arith.constant dense<0.000000e+00> : vector<8x8xf32>
    %18 = tpu.matmul %9, %17, %cst_6 {dimension_numbers = #tpu.dot_dimension_numbers<[1], [1], [0], [0], [0, 0, 1, 0], [], []>} : vector<8x128xf32>, vector<8x128xf32>, vector<8x8xf32> -> vector<8x8xf32>
    %cst_7 = arith.constant 2.000000e+00 : f32
    %19 = vector.broadcast %cst_7 : f32 to vector<8x8xf32>
    %20 = arith.mulf %18, %19 : vector<8x8xf32>
    %cst_8 = arith.constant 9.99999971E-10 : f32
    %21 = vector.broadcast %cst_8 : f32 to vector<8x8xf32>
    %22 = arith.maximumf %20, %21 : vector<8x8xf32>
    %23 = math.exp %22 : vector<8x8xf32>
    %24 = tpu.iota {dimensions = array<i32: 1>} : vector<8x8xi32>
    %25 = tpu.iota {dimensions = array<i32: 0>} : vector<8x8xi32>
    %c8_i32 = arith.constant 8 : i32
    %26 = arith.muli %arg0, %c8_i32 : i32
    %27 = vector.broadcast %26 : i32 to vector<8x8xi32>
    %28 = arith.addi %25, %27 : vector<8x8xi32>
    %cst_9 = arith.constant dense<0.000000e+00> : vector<8xf32>
    %29 = vector.multi_reduction <add>, %23, %cst_9 [1] : vector<8x8xf32> to vector<8xf32>
    %30 = vector.shape_cast %29 : vector<8xf32> to vector<8x1xf32>
    %31 = arith.cmpi eq, %24, %28 : vector<8x8xi32>
    %cst_10 = arith.constant 0.000000e+00 : f32
    %32 = vector.broadcast %cst_10 : f32 to vector<8x8xf32>
    %33 = arith.select %31, %23, %32 : vector<8x8xi1>, vector<8x8xf32>
    %cst_11 = arith.constant dense<0.000000e+00> : vector<8xf32>
    %34 = vector.multi_reduction <add>, %33, %cst_11 [1] : vector<8x8xf32> to vector<8xf32>
    %35 = vector.shape_cast %34 : vector<8xf32> to vector<8x1xf32>
    %36 = arith.subf %30, %35 : vector<8x1xf32>
    %37 = arith.addf %36, %35 : vector<8x1xf32>
    %cst_12 = arith.constant 9.99999971E-10 : f32
    %38 = vector.broadcast %cst_12 : f32 to vector<8x1xf32>
    %39 = arith.maximumf %37, %38 : vector<8x1xf32>
    %40 = math.log %39 : vector<8x1xf32>
    %41 = math.log %36 : vector<8x1xf32>
    %42 = arith.subf %40, %41 : vector<8x1xf32>
    %c0_13 = arith.constant 0 : index
    %c0_14 = arith.constant 0 : index
    %43 = vector.load %arg3[%c0_13, %c0_14] : memref<8x1xf32, #tpu.memory_space<vmem>>, vector<8x1xf32>
    tpu.vector_store %arg3[%c0_13, %c0_14], %42 {strides = array<i32>} : memref<8x1xf32, #tpu.memory_space<vmem>>, vector<8x1xf32>,
    return
  }
  func.func @transform_0(%arg0: i32) -> (i32, i32) {
    %c0_i32 = arith.constant 0 : i32
    %c0_i32_0 = arith.constant 0 : i32
    return %arg0, %c0_i32 : i32, i32
  }
  func.func @transform_1(%arg0: i32) -> (i32, i32) {
    %c0_i32 = arith.constant 0 : i32
    %c0_i32_0 = arith.constant 0 : i32
    %c0_i32_1 = arith.constant 0 : i32
    return %c0_i32, %c0_i32_0 : i32, i32
  }
  func.func @transform_2(%arg0: i32) -> (i32, i32) {
    %c0_i32 = arith.constant 0 : i32
    %c0_i32_0 = arith.constant 0 : i32
    return %arg0, %c0_i32 : i32, i32
  }
}

</mosaic_0001>

<bundles_post_ra>
// kernel: tpu_custom_call.1
= control target key start
LH: loop header
LB: loop body
LE: loop exit
PB: predicated region body
PF: predicated region fallthrough
CT: control target
= control target key end

     0   :  { %7 = vsyncpa [#allocation3], 0  ;;  %s217_s0 = inlined_call_operand.hbm [shape: f32[8,128], index: 0, kind: input, shape index: {}]   ;;  %s218_s1 = inlined_call_operand.hbm [shape: f32[8,128], index: 1, kind: input, shape index: {}]   ;;  %s219_s2 = inlined_call_operand.vmem [shape: f32[8,1], index: 2, kind: output, shape index: {}]  }
   0x1   :  { %s14_s11 = sshll.u32 %s217_s0, 4  ;;  %s15_s11 = int_to_ptr.hbm [resolvable:$true] %s14_s11 }
   0x2   :  { %8 = vsyncpa [#allocation5], 0  ;;  %s191_s12 = smov [#allocation2]   ;;  %s25_s16 = sshll.u32 %s218_s1, 4  ;;  %s26_s16 = int_to_ptr.hbm [resolvable:$true] %s25_s16 }
   0x3   :  { %s16_s13 = sshll.u32 %s191_s12, 4  ;;  %s192_s17 = smov [#allocation4]   ;;  %s17_s13 = int_to_ptr.vmem [resolvable:$true] %s16_s13 }
   0x4   :  { %19 = dma.hbm_to_vmem [thread:$0]  %s15_s11, 128, %s17_s13, [#allocation3]  }
   0x5   :  { %s27_s18 = sshll.u32 %s192_s17, 4  ;;  %s28_s18 = int_to_ptr.vmem [resolvable:$true] %s27_s18 }
   0x6   :  { %30 = dma.hbm_to_vmem [thread:$0]  %s26_s16, 128, %s28_s18, [#allocation5]  }
   0x7   :  { %187 = dma.done.wait [#allocation3], 128  }
   0x8   :  { %188 = vsyncadd [#allocation3], 4294967168 }
   0x9   :  { %189 = dma.done.wait [#allocation5], 128  }
   0xa   :  { %190 = vsyncadd [#allocation5], 4294967168  ;;  %v40_v0 = vld [vmem:[#allocation4] sm:$0xff]  ;;  %v39_v2 = vld [vmem:[#allocation2] sm:$0xff]  ;;  %v95_v28 = vlaneseq  ;;  %vm102_vm6 = vcmask 64512   ;;  %vm119_vm8 = vcmask 7168  }
   0xb   :  { %v56_v1 = vmul.f32 %v40_v0, %v40_v0  ;;  %v41_v3 = vmul.f32 %v39_v2, %v39_v2 }
   0xc   :  { %v96_v29 = vand.u32 127, %v95_v28  ;;  %v98_v30 = vshrl.u32 %v95_v28, 7 }
   0xd   :  { %57 = vadd.xlane.f32.xlu0 %v56_v1 }
   0xe   :  { %vm106_vm7 = vcmp.eq.s32.totalorder %v96_v29, %v98_v30 }
  0x15   :  { %42 = vadd.xlane.f32.xlu0 %v41_v3 }
  0x80   :  { %v58_v4 = vpop.xlane.xlu0 %57 }
  0x81   :  { %v59_v5 = vmax.f32 %v58_v4, 1e-24 }
  0x83   :  { %129 = vrsqrt.f32 %v59_v5  ;;  %vm66_vm1 = vweird.f32 %v59_v5 }
  0x88   :  { %v43_v6 = vpop.xlane.xlu0 %42 }
  0x89   :  { %v130_v7 = vpop.eup %129  ;;  %v44_v8 = vmax.f32 %v43_v6, 1e-24 }
  0x8a   :  { %v61_v9 = vmul.f32 %v130_v7, %v59_v5  ;;  %vm67_vm0 = vweird.f32 %v130_v7 }
  0x8b   :  { %131 = vrsqrt.f32 %v44_v8  ;;  %vm68_vm2 = vmor %vm66_vm1, %vm67_vm0  ;;  %vm51_vm4 = vweird.f32 %v44_v8 }
  0x8c   :  { %v62_v10 = vmul.f32 %v130_v7, %v61_v9 }
  0x8e   :  { %v63_v11 = vmul.f32 0.5, %v62_v10 }
  0x90   :  { %v64_v12 = vsub.f32 1.5, %v63_v11 }
  0x91   :  { %v132_v13 = vpop.eup %131 }
  0x92   :  { %v46_v14 = vmul.f32 %v132_v13, %v44_v8  ;;  %v65_v15 = vmul.f32 %v130_v7, %v64_v12  ;;  %vm52_vm3 = vweird.f32 %v132_v13 }
  0x93   :  { %vm53_vm5 = vmor %vm51_vm4, %vm52_vm3 }
  0x94   :  { %v47_v16 = vmul.f32 %v132_v13, %v46_v14  ;;  %v69_v17 = vsel %vm68_vm2, %v130_v7, %v65_v15 }
  0x95   :  { %v70_v18 = vmul.f32 %v69_v17, %v40_v0 }
  0x96   :  { %v48_v19 = vmul.f32 0.5, %v47_v16 }
  0x97   :  { %86 = vmatpush.xpose.msra.mxu0 %v70_v18 }
  0x98   :  { %v49_v20 = vsub.f32 1.5, %v48_v19 }
  0x9a   :  { %v50_v21 = vmul.f32 %v132_v13, %v49_v20 }
  0x9c   :  { %v54_v22 = vsel %vm53_vm5, %v132_v13, %v50_v21 }
  0x9d   :  { %v55_v23 = vmul.f32 %v54_v22, %v39_v2 }
  0x9f   :  { %87 = vmatmul.f32.vlgmr.msra.gmra.mxu0 %v55_v23 }
 0x11c   :  { %v88_v24 = vpop.f32.mrf.mxu0 }
 0x11d   :  { %v91_v25 = vmul.f32 2.0, %v88_v24 }
 0x11f   :  { %v92_v26 = vmax.f32 %v91_v25, 1e-09 }
 0x121   :  { %v93_v27 = vmul.f32 1.442695, %v92_v26 }
 0x123   :  { %133 = vpow2.f32 %v93_v27 }
 0x129   :  { %v134_v31 = vpop.eup %133 }
 0x12a   :  { %v103_v32 = vsel %vm102_vm6, %v134_v31, 0.0  ;;  %v107_v33 = vsel %vm106_vm7, %v134_v31, 0.0 }
 0x12b   :  { %104 = vadd.xlane.f32.xlu1 %v103_v32  ;;  %v108_v34 = vsel %vm102_vm6, %v107_v33, 0.0 }
 0x133   :  { %109 = vadd.xlane.f32.xlu1 %v108_v34 }
 0x19e   :  { %v105_v35 = vpop.xlane.xlu1 %104 }
 0x1a6   :  { %v110_v36 = vpop.xlane.xlu1 %109 }
 0x1a7   :  { %v111_v37 = vsub.f32 %v105_v35, %v110_v36 }
 0x1a9   :  { %v112_v38 = vadd.f32 %v111_v37, %v110_v36  ;;  %135 = vlog2.f32 %v111_v37 }
 0x1ab   :  { %v113_v39 = vmax.f32 %v112_v38, 1e-09 }
 0x1ad   :  { %137 = vlog2.f32 %v113_v39 }
 0x1af   :  { %v136_v40 = vpop.eup %135 }
 0x1b0   :  { %v117_v43 = vmul.f32 0.6931472, %v136_v40 }
 0x1b3   :  { %v138_v41 = vpop.eup %137 }
 0x1b4   :  { %v115_v42 = vmul.f32 0.6931472, %v138_v41 }
 0x1b6   :  { %v118_v44 = vsub.f32 %v115_v42, %v117_v43 }
 0x1b8   :  { %120 = vst.msk [vmem:[%s219_s2] sm:$0xff] %vm119_vm8, %v118_v44 }
 0x1b9   :  { %125 = vsyncpa [#allocation3], 1 }
 0x1ba   :  { %126 = vsyncpa [#allocation5], 1 }

</bundles_post_ra>
